<compile_context>
chip_gen: v5e
topology: v5e:2x2
jax: 0.10.0
libtpu: 0.0.40
codegen_flags: <defaults>
</compile_context>

<pallas_src>
import functools
import math

import jax
import jax.numpy as jnp
from jax.experimental import pallas as pl
from jax.experimental.pallas import tpu as pltpu


def _round_up(a, b):
    return ((a + b - 1) // b) * b


# ----------------------------------------------------------------------------
# Pallas kernel: hot path over one (tile_n, tile_f) packed input tile.
# ----------------------------------------------------------------------------
def _pwl_kernel(x_ref, knot_ref, dslope_ref, dicept_ref, base_ref, *out_refs,
                num_knot, require_slope):
    # x_ref:      (TN, TF)   packed input tile (native dtype)
    # knot_ref:   (K,  TF)   sorted knot x-positions (lane-tiled)
    # dslope_ref: (K,  TF)   slope_c[k+1] - slope_c[k]
    # dicept_ref: (K,  TF)   intercept[k+1] - intercept[k]
    # base_ref:   (2,  TF)   row0 = slope_c[:,0], row1 = intercept[:,0]
    out_ref = out_refs[0]
    x = x_ref[...].astype(jnp.float32)

    slope_sel = jnp.broadcast_to(base_ref[0, :][None, :], x.shape)
    icept_sel = jnp.broadcast_to(base_ref[1, :][None, :], x.shape)

    # Knots are sorted per feature, so (x >= knot_k) is a monotone prefix mask
    # and the per-feature gathers telescope into masked difference sums.
    for k in range(num_knot):
        ge = x >= knot_ref[k, :][None, :]
        slope_sel = jnp.where(ge, slope_sel + dslope_ref[k, :][None, :], slope_sel)
        icept_sel = jnp.where(ge, icept_sel + dicept_ref[k, :][None, :], icept_sel)

    out_ref[...] = (icept_sel + x * slope_sel).astype(out_ref.dtype)
    if require_slope:
        out_refs[1][...] = slope_sel.astype(out_refs[1].dtype)


# ----------------------------------------------------------------------------
# Wrapper: parameter preprocessing (tiny, parameter-sized glue) + pallas_call.
# ----------------------------------------------------------------------------
def piecewise_linear_forward(x, x_pos, slope, y_bias, *, eps=1e-3,
                             tile_n=4096, require_slope=True):
    """x: (N, F). x_pos: (F, K). slope: (F, K+1). y_bias: (F, 1)."""
    N, F = x.shape
    feature, K = x_pos.shape
    assert feature == F and slope.shape == (F, K + 1) and y_bias.shape == (F, 1)
    out_dtype = x.dtype

    # --- parameter-sized glue: sort / cumsum / softplus on tiny (F, K) tables
    slope_c = jax.nn.softplus(slope.astype(jnp.float32)) + eps    # (F, K+1)
    knots = jnp.sort(x_pos.astype(jnp.float32), axis=1)           # (F, K)
    delta_x = jnp.roll(knots, -1, axis=1) - knots                 # (F, K)
    delta_y = delta_x * slope_c[:, 1:]                            # (F, K)
    tmp = jnp.concatenate([knots[:, :1] + y_bias.astype(jnp.float32),
                           delta_y[:, :-1]], axis=1)
    y_pos = jnp.cumsum(tmp, axis=1)                               # (F, K)

    # Per-segment intercept table:
    #   intercept[f, idx] = y_pos[f, xidx] - knots[f, xidx] * slope_c[f, idx],
    #   xidx = max(idx - 1, 0), idx in [0, K]
    # so that  out = intercept[f, idx] + x * slope_c[f, idx].
    xidx = jnp.maximum(jnp.arange(K + 1) - 1, 0)                  # (K+1,)
    intercept = y_pos[:, xidx] - knots[:, xidx] * slope_c         # (F, K+1)

    # Telescoping delta tables over the knot index.
    d_slope = slope_c[:, 1:] - slope_c[:, :-1]                    # (F, K)
    d_icept = intercept[:, 1:] - intercept[:, :-1]                # (F, K)
    base = jnp.stack([slope_c[:, 0], intercept[:, 0]], axis=0)    # (2, F)

    # --- lane packing: fold `pack` batch rows into the 128-lane axis --------
    # pack = lcm(F, 128) // F gives lane-dense (multiple-of-128) stores for
    # any F whose lcm with 128 stays <= 512 lanes.
    pack = 1
    if F <= 128:
        lcm = F * 128 // math.gcd(F, 128)
        if lcm <= 512:
            pack = lcm // F
    Fp = F * pack

    # --- feature blocking (second grid axis) for large, 128-aligned F -------
    if Fp % 128 == 0:
        tile_f = min(Fp, 512)
    else:
        tile_f = Fp                       # block equals full array dim
    nf = pl.cdiv(Fp, tile_f)

    # --- tile / pad batch dimension (handles ragged N, no tile_n rounding) --
    np_min = pl.cdiv(N, pack)                        # packed rows needed
    Np = _round_up(np_min, 8)                        # pad only to sublane mult
    N_pad = Np * pack

    n_out = 2 if require_slope else 1
    tile_n = _round_up(max(8, tile_n), 8)
    # >= 2 row blocks when possible so v7x's 2 TensorCores both get work.
    if Np > 8:
        tile_n = min(tile_n, _round_up(pl.cdiv(Np, 2), 8))
    # Keep the double-buffered (x + outputs) block footprint <= ~28 MiB.
    bytes_per_row = tile_f * (x.dtype.itemsize + n_out * jnp.dtype(out_dtype).itemsize)
    max_rows = max(8, ((28 << 20) // (2 * bytes_per_row)) // 8 * 8)
    tile_n = min(tile_n, max_rows, Np)
    grid = (pl.cdiv(Np, tile_n), nf)

    # Pad rows only up to N_pad (a few rows, not a full tile).
    x_p = x
    if N_pad != N:
        x_p = jnp.pad(x_p, ((0, N_pad - N), (0, 0)))
    x_packed = x_p.reshape(Np, Fp)                   # lane j <-> feature j % F

    def lane_tile(t):                                # (R, F) -> (R, Fp)
        return jnp.tile(t, (1, pack)) if pack > 1 else t

    knots_p = lane_tile(knots.T)                     # (K, Fp)
    dslope_p = lane_tile(d_slope.T)                  # (K, Fp)
    dicept_p = lane_tile(d_icept.T)                  # (K, Fp)
    base_p = lane_tile(base)                         # (2, Fp)

    kernel = functools.partial(_pwl_kernel, num_knot=K, require_slope=require_slope)

    out_shapes = tuple(jax.ShapeDtypeStruct((Np, Fp), out_dtype) for _ in range(n_out))
    out_specs = [pl.BlockSpec((tile_n, tile_f), lambda i, j: (i, j))
                 for _ in range(n_out)]

    block_bytes = 2 * tile_n * bytes_per_row
    param_bytes = 2 * (3 * K + 2) * Fp * 4
    vmem_limit = int(min(60 << 20, max(32 << 20, block_bytes + param_bytes + (16 << 20))))

    cost = pl.CostEstimate(
        flops=Np * Fp * (5 * K + 3),
        transcendentals=0,
        bytes_accessed=Np * Fp * (x.dtype.itemsize
                                  + n_out * jnp.dtype(out_dtype).itemsize)
                       + (3 * K + 2) * Fp * 4,
    )

    results = pl.pallas_call(
        kernel,
        out_shape=out_shapes,
        grid_spec=pltpu.PrefetchScalarGridSpec(
            num_scalar_prefetch=0,
            grid=grid,
            in_specs=[
                pl.BlockSpec((tile_n, tile_f), lambda i, j: (i, j)),   # x tile
                pl.BlockSpec((K, tile_f), lambda i, j: (0, j)),        # knots (resident)
                pl.BlockSpec((K, tile_f), lambda i, j: (0, j)),        # d_slope
                pl.BlockSpec((K, tile_f), lambda i, j: (0, j)),        # d_intercept
                pl.BlockSpec((2, tile_f), lambda i, j: (0, j)),        # base (slope0, b0)
            ],
            out_specs=out_specs,
        ),
        compiler_params=pltpu.CompilerParams(
            dimension_semantics=("parallel", "parallel"),
            vmem_limit_bytes=vmem_limit),
        cost_estimate=cost,
    )(x_packed, knots_p, dslope_p, dicept_p, base_p)

    out = results[0].reshape(N_pad, F)[:N]
    if not require_slope:
        return out
    slope_sel = results[1].reshape(N_pad, F)[:N]
    return out, slope_sel


# ----------------------------------------------------------------------------
# Pure-JAX reference (gather-based, mirrors the PyTorch forward exactly).
# ----------------------------------------------------------------------------
def reference_forward(x, x_pos, slope, y_bias, eps=1e-3):
    slope_c = jax.nn.softplus(slope) + eps                        # (F, K+1)
    knots = jnp.sort(x_pos, axis=1)                               # (F, K)
    delta_x = jnp.roll(knots, -1, axis=1) - knots
    delta_y = delta_x * slope_c[:, 1:]
    tmp = jnp.concatenate([knots[:, :1] + y_bias, delta_y[:, :-1]], axis=1)
    y_pos = jnp.cumsum(tmp, axis=1)                               # (F, K)

    # torchutils.searchsorted: per-feature count of knots <= x  -> (N, F)
    slope_idx = jnp.sum(x[:, :, None] >= knots[None, :, :], axis=-1)
    x_idx = jnp.maximum(slope_idx - 1, 0)                         # relu(idx-1)

    slope_sel = jnp.take_along_axis(slope_c, slope_idx.T, axis=1).T
    x_sel = jnp.take_along_axis(knots, x_idx.T, axis=1).T
    y_sel = jnp.take_along_axis(y_pos, x_idx.T, axis=1).T
    out = y_sel + (x - x_sel) * slope_sel
    return out, slope_sel


if __name__ == "__main__":
    key = jax.random.PRNGKey(0)
    kx, kp, kx2 = jax.random.split(key, 3)

    # --- small case consistent with the module (batch=16, feature=32, K=7) --
    N, F, K = 16, 32, 7          # num_spline = 8
    x_pos = jax.random.normal(kp, (F, K), dtype=jnp.float32)      # randn
    slope = jnp.ones((F, K + 1), dtype=jnp.float32)               # ones
    y_bias = jnp.zeros((F, 1), dtype=jnp.float32)                 # zeros
    x = 2.0 * jax.random.normal(kx, (N, F), dtype=jnp.float32)

    out, slope_sel = piecewise_linear_forward(x, x_pos, slope, y_bias)
    out = jax.block_until_ready(out)
    slope_sel = jax.block_until_ready(slope_sel)

    out_ref, slope_ref = reference_forward(x, x_pos, slope, y_bias)
    assert jnp.allclose(out, out_ref, atol=1e-4, rtol=1e-4), "output mismatch"
    assert jnp.allclose(slope_sel, slope_ref, atol=1e-4, rtol=1e-4), "slope mismatch"

    # --- ragged, multi-tile batch: exercises minimal padding + partial block
    N2 = 5000                    # not a multiple of pack*tile_n
    x2 = 2.0 * jax.random.normal(kx2, (N2, F), dtype=jnp.float32)
    out2, slope2 = piecewise_linear_forward(x2, x_pos, slope, y_bias)
    out2 = jax.block_until_ready(out2)
    slope2 = jax.block_until_ready(slope2)
    out2_ref, slope2_ref = reference_forward(x2, x_pos, slope, y_bias)
    assert jnp.allclose(out2, out2_ref, atol=1e-4, rtol=1e-4), "output mismatch (large)"
    assert jnp.allclose(slope2, slope2_ref, atol=1e-4, rtol=1e-4), "slope mismatch (large)"

    # --- bf16 I/O path (outputs in x.dtype, accumulation in f32) -----------
    x3 = x2.astype(jnp.bfloat16)
    out3, slope3 = piecewise_linear_forward(x3, x_pos, slope, y_bias)
    out3 = jax.block_until_ready(out3)
    out3_ref, slope3_ref = reference_forward(x3.astype(jnp.float32), x_pos, slope, y_bias)
    assert jnp.allclose(out3.astype(jnp.float32), out3_ref, atol=5e-2, rtol=5e-2), \
        "output mismatch (bf16)"
    assert jnp.allclose(slope3.astype(jnp.float32), slope3_ref, atol=5e-2, rtol=5e-2), \
        "slope mismatch (bf16)"

    print("KERNEL_OK")
</pallas_src>

<mosaic_0001>
module attributes {stable_mosaic.version = 11 : i64} {
  func.func @_pwl_kernel(%arg0: i32, %arg1: i32, %arg2: memref<8x128xf32, #tpu.memory_space<vmem>>, %arg3: memref<7x128xf32, #tpu.memory_space<vmem>>, %arg4: memref<7x128xf32, #tpu.memory_space<vmem>>, %arg5: memref<7x128xf32, #tpu.memory_space<vmem>>, %arg6: memref<2x128xf32, #tpu.memory_space<vmem>>, %arg7: memref<8x128xf32, #tpu.memory_space<vmem>>, %arg8: memref<8x128xf32, #tpu.memory_space<vmem>>) attributes {dimension_semantics = [#tpu.dimension_semantics<parallel>, #tpu.dimension_semantics<parallel>], iteration_bounds = array<i64: 1, 1>, scalar_prefetch = 0 : i64, scratch_operands = 0 : i64, tpu.core_type = #tpu.core_type<tc>, window_params = [{transform_indices = @transform_0, window_bounds = array<i64: 8, 128>}, {transform_indices = @transform_1, window_bounds = array<i64: 7, 128>}, {transform_indices = @transform_2, window_bounds = array<i64: 7, 128>}, {transform_indices = @transform_3, window_bounds = array<i64: 7, 128>}, {transform_indices = @transform_4, window_bounds = array<i64: 2, 128>}, {transform_indices = @transform_5, window_bounds = array<i64: 8, 128>}, {transform_indices = @transform_6, window_bounds = array<i64: 8, 128>}]} {
    %c0 = arith.constant 0 : index
    %c0_0 = arith.constant 0 : index
    %0 = vector.load %arg2[%c0, %c0_0] : memref<8x128xf32, #tpu.memory_space<vmem>>, vector<8x128xf32>
    %c0_1 = arith.constant 0 : index
    %c0_2 = arith.constant 0 : index
    %1 = vector.load %arg6[%c0_1, %c0_2] : memref<2x128xf32, #tpu.memory_space<vmem>>, vector<1x128xf32>
    %2 = vector.shape_cast %1 : vector<1x128xf32> to vector<128xf32>
    %3 = vector.shape_cast %2 : vector<128xf32> to vector<1x128xf32>
    %4 = vector.shape_cast %3 : vector<1x128xf32> to vector<1x128xf32>
    %5 = vector.broadcast %4 : vector<1x128xf32> to vector<8x128xf32>
    %c1 = arith.constant 1 : index
    %c0_3 = arith.constant 0 : index
    %6 = vector.load %arg6[%c1, %c0_3] : memref<2x128xf32, #tpu.memory_space<vmem>>, vector<1x128xf32>
    %7 = vector.shape_cast %6 : vector<1x128xf32> to vector<128xf32>
    %8 = vector.shape_cast %7 : vector<128xf32> to vector<1x128xf32>
    %9 = vector.shape_cast %8 : vector<1x128xf32> to vector<1x128xf32>
    %10 = vector.broadcast %9 : vector<1x128xf32> to vector<8x128xf32>
    %c0_4 = arith.constant 0 : index
    %c0_5 = arith.constant 0 : index
    %11 = vector.load %arg3[%c0_4, %c0_5] : memref<7x128xf32, #tpu.memory_space<vmem>>, vector<1x128xf32>
    %12 = vector.shape_cast %11 : vector<1x128xf32> to vector<128xf32>
    %13 = vector.shape_cast %12 : vector<128xf32> to vector<1x128xf32>
    %14 = vector.broadcast %13 : vector<1x128xf32> to vector<8x128xf32>
    %15 = arith.cmpf oge, %0, %14 : vector<8x128xf32>
    %c0_6 = arith.constant 0 : index
    %c0_7 = arith.constant 0 : index
    %16 = vector.load %arg4[%c0_6, %c0_7] : memref<7x128xf32, #tpu.memory_space<vmem>>, vector<1x128xf32>
    %17 = vector.shape_cast %16 : vector<1x128xf32> to vector<128xf32>
    %18 = vector.shape_cast %17 : vector<128xf32> to vector<1x128xf32>
    %19 = vector.broadcast %18 : vector<1x128xf32> to vector<8x128xf32>
    %20 = arith.addf %5, %19 : vector<8x128xf32>
    %21 = arith.select %15, %20, %5 : vector<8x128xi1>, vector<8x128xf32>
    %c0_8 = arith.constant 0 : index
    %c0_9 = arith.constant 0 : index
    %22 = vector.load %arg5[%c0_8, %c0_9] : memref<7x128xf32, #tpu.memory_space<vmem>>, vector<1x128xf32>
    %23 = vector.shape_cast %22 : vector<1x128xf32> to vector<128xf32>
    %24 = vector.shape_cast %23 : vector<128xf32> to vector<1x128xf32>
    %25 = vector.broadcast %24 : vector<1x128xf32> to vector<8x128xf32>
    %26 = arith.addf %10, %25 : vector<8x128xf32>
    %27 = arith.select %15, %26, %10 : vector<8x128xi1>, vector<8x128xf32>
    %c1_10 = arith.constant 1 : index
    %c0_11 = arith.constant 0 : index
    %28 = vector.load %arg3[%c1_10, %c0_11] : memref<7x128xf32, #tpu.memory_space<vmem>>, vector<1x128xf32>
    %29 = vector.shape_cast %28 : vector<1x128xf32> to vector<128xf32>
    %30 = vector.shape_cast %29 : vector<128xf32> to vector<1x128xf32>
    %31 = vector.broadcast %30 : vector<1x128xf32> to vector<8x128xf32>
    %32 = arith.cmpf oge, %0, %31 : vector<8x128xf32>
    %c1_12 = arith.constant 1 : index
    %c0_13 = arith.constant 0 : index
    %33 = vector.load %arg4[%c1_12, %c0_13] : memref<7x128xf32, #tpu.memory_space<vmem>>, vector<1x128xf32>
    %34 = vector.shape_cast %33 : vector<1x128xf32> to vector<128xf32>
    %35 = vector.shape_cast %34 : vector<128xf32> to vector<1x128xf32>
    %36 = vector.broadcast %35 : vector<1x128xf32> to vector<8x128xf32>
    %37 = arith.addf %21, %36 : vector<8x128xf32>
    %38 = arith.select %32, %37, %21 : vector<8x128xi1>, vector<8x128xf32>
    %c1_14 = arith.constant 1 : index
    %c0_15 = arith.constant 0 : index
    %39 = vector.load %arg5[%c1_14, %c0_15] : memref<7x128xf32, #tpu.memory_space<vmem>>, vector<1x128xf32>
    %40 = vector.shape_cast %39 : vector<1x128xf32> to vector<128xf32>
    %41 = vector.shape_cast %40 : vector<128xf32> to vector<1x128xf32>
    %42 = vector.broadcast %41 : vector<1x128xf32> to vector<8x128xf32>
    %43 = arith.addf %27, %42 : vector<8x128xf32>
    %44 = arith.select %32, %43, %27 : vector<8x128xi1>, vector<8x128xf32>
    %c2 = arith.constant 2 : index
    %c0_16 = arith.constant 0 : index
    %45 = vector.load %arg3[%c2, %c0_16] : memref<7x128xf32, #tpu.memory_space<vmem>>, vector<1x128xf32>
    %46 = vector.shape_cast %45 : vector<1x128xf32> to vector<128xf32>
    %47 = vector.shape_cast %46 : vector<128xf32> to vector<1x128xf32>
    %48 = vector.broadcast %47 : vector<1x128xf32> to vector<8x128xf32>
    %49 = arith.cmpf oge, %0, %48 : vector<8x128xf32>
    %c2_17 = arith.constant 2 : index
    %c0_18 = arith.constant 0 : index
    %50 = vector.load %arg4[%c2_17, %c0_18] : memref<7x128xf32, #tpu.memory_space<vmem>>, vector<1x128xf32>
    %51 = vector.shape_cast %50 : vector<1x128xf32> to vector<128xf32>
    %52 = vector.shape_cast %51 : vector<128xf32> to vector<1x128xf32>
    %53 = vector.broadcast %52 : vector<1x128xf32> to vector<8x128xf32>
    %54 = arith.addf %38, %53 : vector<8x128xf32>
    %55 = arith.select %49, %54, %38 : vector<8x128xi1>, vector<8x128xf32>
    %c2_19 = arith.constant 2 : index
    %c0_20 = arith.constant 0 : index
    %56 = vector.load %arg5[%c2_19, %c0_20] : memref<7x128xf32, #tpu.memory_space<vmem>>, vector<1x128xf32>
    %57 = vector.shape_cast %56 : vector<1x128xf32> to vector<128xf32>
    %58 = vector.shape_cast %57 : vector<128xf32> to vector<1x128xf32>
    %59 = vector.broadcast %58 : vector<1x128xf32> to vector<8x128xf32>
    %60 = arith.addf %44, %59 : vector<8x128xf32>
    %61 = arith.select %49, %60, %44 : vector<8x128xi1>, vector<8x128xf32>
    %c3 = arith.constant 3 : index
    %c0_21 = arith.constant 0 : index
    %62 = vector.load %arg3[%c3, %c0_21] : memref<7x128xf32, #tpu.memory_space<vmem>>, vector<1x128xf32>
    %63 = vector.shape_cast %62 : vector<1x128xf32> to vector<128xf32>
    %64 = vector.shape_cast %63 : vector<128xf32> to vector<1x128xf32>
    %65 = vector.broadcast %64 : vector<1x128xf32> to vector<8x128xf32>
    %66 = arith.cmpf oge, %0, %65 : vector<8x128xf32>
    %c3_22 = arith.constant 3 : index
    %c0_23 = arith.constant 0 : index
    %67 = vector.load %arg4[%c3_22, %c0_23] : memref<7x128xf32, #tpu.memory_space<vmem>>, vector<1x128xf32>
    %68 = vector.shape_cast %67 : vector<1x128xf32> to vector<128xf32>
    %69 = vector.shape_cast %68 : vector<128xf32> to vector<1x128xf32>
    %70 = vector.broadcast %69 : vector<1x128xf32> to vector<8x128xf32>
    %71 = arith.addf %55, %70 : vector<8x128xf32>
    %72 = arith.select %66, %71, %55 : vector<8x128xi1>, vector<8x128xf32>
    %c3_24 = arith.constant 3 : index
    %c0_25 = arith.constant 0 : index
    %73 = vector.load %arg5[%c3_24, %c0_25] : memref<7x128xf32, #tpu.memory_space<vmem>>, vector<1x128xf32>
    %74 = vector.shape_cast %73 : vector<1x128xf32> to vector<128xf32>
    %75 = vector.shape_cast %74 : vector<128xf32> to vector<1x128xf32>
    %76 = vector.broadcast %75 : vector<1x128xf32> to vector<8x128xf32>
    %77 = arith.addf %61, %76 : vector<8x128xf32>
    %78 = arith.select %66, %77, %61 : vector<8x128xi1>, vector<8x128xf32>
    %c4 = arith.constant 4 : index
    %c0_26 = arith.constant 0 : index
    %79 = vector.load %arg3[%c4, %c0_26] : memref<7x128xf32, #tpu.memory_space<vmem>>, vector<1x128xf32>
    %80 = vector.shape_cast %79 : vector<1x128xf32> to vector<128xf32>
    %81 = vector.shape_cast %80 : vector<128xf32> to vector<1x128xf32>
    %82 = vector.broadcast %81 : vector<1x128xf32> to vector<8x128xf32>
    %83 = arith.cmpf oge, %0, %82 : vector<8x128xf32>
    %c4_27 = arith.constant 4 : index
    %c0_28 = arith.constant 0 : index
    %84 = vector.load %arg4[%c4_27, %c0_28] : memref<7x128xf32, #tpu.memory_space<vmem>>, vector<1x128xf32>
    %85 = vector.shape_cast %84 : vector<1x128xf32> to vector<128xf32>
    %86 = vector.shape_cast %85 : vector<128xf32> to vector<1x128xf32>
    %87 = vector.broadcast %86 : vector<1x128xf32> to vector<8x128xf32>
    %88 = arith.addf %72, %87 : vector<8x128xf32>
    %89 = arith.select %83, %88, %72 : vector<8x128xi1>, vector<8x128xf32>
    %c4_29 = arith.constant 4 : index
    %c0_30 = arith.constant 0 : index
    %90 = vector.load %arg5[%c4_29, %c0_30] : memref<7x128xf32, #tpu.memory_space<vmem>>, vector<1x128xf32>
    %91 = vector.shape_cast %90 : vector<1x128xf32> to vector<128xf32>
    %92 = vector.shape_cast %91 : vector<128xf32> to vector<1x128xf32>
    %93 = vector.broadcast %92 : vector<1x128xf32> to vector<8x128xf32>
    %94 = arith.addf %78, %93 : vector<8x128xf32>
    %95 = arith.select %83, %94, %78 : vector<8x128xi1>, vector<8x128xf32>
    %c5 = arith.constant 5 : index
    %c0_31 = arith.constant 0 : index
    %96 = vector.load %arg3[%c5, %c0_31] : memref<7x128xf32, #tpu.memory_space<vmem>>, vector<1x128xf32>
    %97 = vector.shape_cast %96 : vector<1x128xf32> to vector<128xf32>
    %98 = vector.shape_cast %97 : vector<128xf32> to vector<1x128xf32>
    %99 = vector.broadcast %98 : vector<1x128xf32> to vector<8x128xf32>
    %100 = arith.cmpf oge, %0, %99 : vector<8x128xf32>
    %c5_32 = arith.constant 5 : index
    %c0_33 = arith.constant 0 : index
    %101 = vector.load %arg4[%c5_32, %c0_33] : memref<7x128xf32, #tpu.memory_space<vmem>>, vector<1x128xf32>
    %102 = vector.shape_cast %101 : vector<1x128xf32> to vector<128xf32>
    %103 = vector.shape_cast %102 : vector<128xf32> to vector<1x128xf32>
    %104 = vector.broadcast %103 : vector<1x128xf32> to vector<8x128xf32>
    %105 = arith.addf %89, %104 : vector<8x128xf32>
    %106 = arith.select %100, %105, %89 : vector<8x128xi1>, vector<8x128xf32>
    %c5_34 = arith.constant 5 : index
    %c0_35 = arith.constant 0 : index
    %107 = vector.load %arg5[%c5_34, %c0_35] : memref<7x128xf32, #tpu.memory_space<vmem>>, vector<1x128xf32>
    %108 = vector.shape_cast %107 : vector<1x128xf32> to vector<128xf32>
    %109 = vector.shape_cast %108 : vector<128xf32> to vector<1x128xf32>
    %110 = vector.broadcast %109 : vector<1x128xf32> to vector<8x128xf32>
    %111 = arith.addf %95, %110 : vector<8x128xf32>
    %112 = arith.select %100, %111, %95 : vector<8x128xi1>, vector<8x128xf32>
    %c6 = arith.constant 6 : index
    %c0_36 = arith.constant 0 : index
    %113 = vector.load %arg3[%c6, %c0_36] : memref<7x128xf32, #tpu.memory_space<vmem>>, vector<1x128xf32>
    %114 = vector.shape_cast %113 : vector<1x128xf32> to vector<128xf32>
    %115 = vector.shape_cast %114 : vector<128xf32> to vector<1x128xf32>
    %116 = vector.broadcast %115 : vector<1x128xf32> to vector<8x128xf32>
    %117 = arith.cmpf oge, %0, %116 : vector<8x128xf32>
    %c6_37 = arith.constant 6 : index
    %c0_38 = arith.constant 0 : index
    %118 = vector.load %arg4[%c6_37, %c0_38] : memref<7x128xf32, #tpu.memory_space<vmem>>, vector<1x128xf32>
    %119 = vector.shape_cast %118 : vector<1x128xf32> to vector<128xf32>
    %120 = vector.shape_cast %119 : vector<128xf32> to vector<1x128xf32>
    %121 = vector.broadcast %120 : vector<1x128xf32> to vector<8x128xf32>
    %122 = arith.addf %106, %121 : vector<8x128xf32>
    %123 = arith.select %117, %122, %106 : vector<8x128xi1>, vector<8x128xf32>
    %c6_39 = arith.constant 6 : index
    %c0_40 = arith.constant 0 : index
    %124 = vector.load %arg5[%c6_39, %c0_40] : memref<7x128xf32, #tpu.memory_space<vmem>>, vector<1x128xf32>
    %125 = vector.shape_cast %124 : vector<1x128xf32> to vector<128xf32>
    %126 = vector.shape_cast %125 : vector<128xf32> to vector<1x128xf32>
    %127 = vector.broadcast %126 : vector<1x128xf32> to vector<8x128xf32>
    %128 = arith.addf %112, %127 : vector<8x128xf32>
    %129 = arith.select %117, %128, %112 : vector<8x128xi1>, vector<8x128xf32>
    %130 = arith.mulf %0, %123 : vector<8x128xf32>
    %131 = arith.addf %129, %130 : vector<8x128xf32>
    %c0_41 = arith.constant 0 : index
    %c0_42 = arith.constant 0 : index
    %132 = vector.load %arg7[%c0_41, %c0_42] : memref<8x128xf32, #tpu.memory_space<vmem>>, vector<8x128xf32>
    tpu.vector_store %arg7[%c0_41, %c0_42], %131 {strides = array<i32>} : memref<8x128xf32, #tpu.memory_space<vmem>>, vector<8x128xf32>,
    %c0_43 = arith.constant 0 : index
    %c0_44 = arith.constant 0 : index
    %133 = vector.load %arg8[%c0_43, %c0_44] : memref<8x128xf32, #tpu.memory_space<vmem>>, vector<8x128xf32>
    tpu.vector_store %arg8[%c0_43, %c0_44], %123 {strides = array<i32>} : memref<8x128xf32, #tpu.memory_space<vmem>>, vector<8x128xf32>,
    return
  }
  func.func @transform_0(%arg0: i32, %arg1: i32) -> (i32, i32) {
    %c0_i32 = arith.constant 0 : i32
    return %arg0, %arg1 : i32, i32
  }
  func.func @transform_1(%arg0: i32, %arg1: i32) -> (i32, i32) {
    %c0_i32 = arith.constant 0 : i32
    %c0_i32_0 = arith.constant 0 : i32
    return %c0_i32, %arg1 : i32, i32
  }
  func.func @transform_2(%arg0: i32, %arg1: i32) -> (i32, i32) {
    %c0_i32 = arith.constant 0 : i32
    %c0_i32_0 = arith.constant 0 : i32
    return %c0_i32, %arg1 : i32, i32
  }
  func.func @transform_3(%arg0: i32, %arg1: i32) -> (i32, i32) {
    %c0_i32 = arith.constant 0 : i32
    %c0_i32_0 = arith.constant 0 : i32
    return %c0_i32, %arg1 : i32, i32
  }
  func.func @transform_4(%arg0: i32, %arg1: i32) -> (i32, i32) {
    %c0_i32 = arith.constant 0 : i32
    %c0_i32_0 = arith.constant 0 : i32
    return %c0_i32, %arg1 : i32, i32
  }
  func.func @transform_5(%arg0: i32, %arg1: i32) -> (i32, i32) {
    %c0_i32 = arith.constant 0 : i32
    return %arg0, %arg1 : i32, i32
  }
  func.func @transform_6(%arg0: i32, %arg1: i32) -> (i32, i32) {
    %c0_i32 = arith.constant 0 : i32
    return %arg0, %arg1 : i32, i32
  }
}

</mosaic_0001>

<bundles_post_ra>
// kernel: tpu_custom_call.1
= control target key start
LH: loop header
LB: loop body
LE: loop exit
PB: predicated region body
PF: predicated region fallthrough
CT: control target
= control target key end

     0   :  { %12 = vsyncpa [#allocation3], 0  ;;  %s458_s0 = inlined_call_operand.hbm [shape: f32[8,128], index: 0, kind: input, shape index: {}]   ;;  %s459_s1 = inlined_call_operand.hbm [shape: f32[7,128], index: 1, kind: input, shape index: {}]   ;;  %s460_s2 = inlined_call_operand.hbm [shape: f32[7,128], index: 2, kind: input, shape index: {}]   ;;  %s461_s3 = inlined_call_operand.hbm [shape: f32[7,128], index: 3, kind: input, shape index: {}]   ;;  %s462_s4 = inlined_call_operand.vmem [shape: f32[2,128], index: 4, kind: input, shape index: {}]   ;;  %s463_s5 = inlined_call_operand.hbm [shape: f32[8,128], index: 5, kind: output, shape index: {0}]   ;;  %s464_s6 = inlined_call_operand.hbm [shape: f32[8,128], index: 6, kind: output, shape index: {1}]  }
   0x1   :  { %13 = vsyncpa [#allocation6], 0 }
   0x2   :  { %14 = vsyncpa [#allocation9], 0 }
   0x3   :  { %15 = vsyncpa [#allocation4], 0  ;;  %s33_s23 = sshll.u32 %s459_s1, 4  ;;  %s34_s23 = int_to_ptr.hbm [resolvable:$true] %s33_s23 }
   0x4   :  { %16 = vsyncpa [#allocation12], 0  ;;  %s383_s24 = smov [#allocation5]   ;;  %s22_s28 = sshll.u32 %s458_s0, 4  ;;  %s23_s28 = int_to_ptr.hbm [resolvable:$true] %s22_s28 }
   0x5   :  { %s35_s25 = sshll.u32 %s383_s24, 4  ;;  %s384_s29 = smov [#allocation2]   ;;  %s36_s25 = int_to_ptr.vmem [resolvable:$true] %s35_s25 }
   0x6   :  { %38 = dma.hbm_to_vmem [thread:$0]  %s34_s23, 128, %s36_s25, [#allocation6]  }
   0x7   :  { %s24_s30 = sshll.u32 %s384_s29, 4  ;;  %s44_s9 = sshll.u32 %s460_s2, 4  ;;  %s25_s30 = int_to_ptr.vmem [resolvable:$true] %s24_s30  ;;  %s45_s9 = int_to_ptr.hbm [resolvable:$true] %s44_s9 }
   0x8   :  { %27 = dma.hbm_to_vmem [thread:$0]  %s23_s28, 128, %s25_s30, [#allocation3]  }
   0x9   :  { %s55_s11 = sshll.u32 %s461_s3, 4  ;;  %s385_s12 = smov [#allocation7]   ;;  %s56_s11 = int_to_ptr.hbm [resolvable:$true] %s55_s11 }
   0xa   :  { %s46_s13 = sshll.u32 %s385_s12, 4  ;;  %s386_s0 = smov [#allocation8]   ;;  %s47_s13 = int_to_ptr.vmem [resolvable:$true] %s46_s13 }
   0xb   :  { %49 = dma.hbm_to_vmem [thread:$0]  %s45_s9, 128, %s47_s13, [#allocation6]  }
   0xc   :  { %s57_s14 = sshll.u32 %s386_s0, 4  ;;  %s58_s14 = int_to_ptr.vmem [resolvable:$true] %s57_s14 }
   0xd   :  { %60 = dma.hbm_to_vmem [thread:$0]  %s56_s11, 128, %s58_s14, [#allocation9]  }
   0xe   :  { %373 = dma.done.wait [#allocation3], 128  }
   0xf   :  { %374 = vsyncadd [#allocation3], 4294967168 }
  0x10   :  { %375 = dma.done.wait [#allocation6], 256  }
  0x11   :  { %376 = vsyncadd [#allocation6], 4294967040 }
  0x12   :  { %377 = dma.done.wait [#allocation9], 128  }
  0x13   :  { %378 = vsyncadd [#allocation9], 4294967168  ;;  %v436_v0 = vld [vmem:[#allocation2] sm:$0xff]  ;;  %v208_v3 = vld [vmem:[#allocation5] ss:$0 sm:$0xff]  ;;  %s183_s20 = sshll.u32 %s464_s6, 4  ;;  %s184_s20 = int_to_ptr.hbm [resolvable:$true] %s183_s20 }
  0x14   :  { %v206_v1 = vld [vmem:[%s462_s4] ss:$0 sm:$0xff]  ;;  %v207_v2 = vld [vmem:[%s462_s4 + $0x1] ss:$0 sm:$0xff]  ;;  %v209_v4 = vld [vmem:[#allocation7] ss:$0 sm:$0xff]  ;;  %vm86_vm0 = vcmp.ge.f32.partialorder %v436_v0, %v208_v3 }
  0x15   :  { %v210_v5 = vld [vmem:[#allocation8] ss:$0 sm:$0xff]  ;;  %v89_v6 = vadd.f32 %v209_v4, %v206_v1  ;;  %v211_v7 = vld [vmem:[#allocation5 + $0x1] ss:$0 sm:$0xff]  ;;  %v212_v8 = vld [vmem:[#allocation7 + $0x1] ss:$0 sm:$0xff] }
  0x16   :  { %v93_v9 = vadd.f32 %v210_v5, %v207_v2  ;;  %v213_v10 = vld [vmem:[#allocation8 + $0x1] ss:$0 sm:$0xff]  ;;  %vm97_vm1 = vcmp.ge.f32.partialorder %v436_v0, %v211_v7  ;;  %v214_v12 = vld [vmem:[#allocation5 + $0x2] ss:$0 sm:$0xff]  ;;  %v215_v13 = vld [vmem:[#allocation7 + $0x2] ss:$0 sm:$0xff] }
  0x17   :  { %v90_v11 = vsel %vm86_vm0, %v89_v6, %v206_v1  ;;  %v216_v16 = vld [vmem:[#allocation8 + $0x2] ss:$0 sm:$0xff]  ;;  %v217_v18 = vld [vmem:[#allocation5 + $0x3] ss:$0 sm:$0xff]  ;;  %vm108_vm2 = vcmp.ge.f32.partialorder %v436_v0, %v214_v12  ;;  %v218_v20 = vld [vmem:[#allocation7 + $0x3] ss:$0 sm:$0xff] }
  0x18   :  { %v94_v14 = vsel %vm86_vm0, %v93_v9, %v207_v2  ;;  %v100_v15 = vadd.f32 %v212_v8, %v90_v11  ;;  %v219_v23 = vld [vmem:[#allocation8 + $0x3] ss:$0 sm:$0xff]  ;;  %v220_v25 = vld [vmem:[#allocation5 + $0x4] ss:$0 sm:$0xff]  ;;  %vm119_vm3 = vcmp.ge.f32.partialorder %v436_v0, %v217_v18  ;;  %v221_v27 = vld [vmem:[#allocation7 + $0x4] ss:$0 sm:$0xff] }
  0x19   :  { %v104_v17 = vadd.f32 %v213_v10, %v94_v14  ;;  %v222_v30 = vld [vmem:[#allocation8 + $0x4] ss:$0 sm:$0xff]  ;;  %v223_v32 = vld [vmem:[#allocation5 + $0x5] ss:$0 sm:$0xff]  ;;  %vm130_vm4 = vcmp.ge.f32.partialorder %v436_v0, %v220_v25  ;;  %v224_v34 = vld [vmem:[#allocation7 + $0x5] ss:$0 sm:$0xff] }
  0x1a   :  { %v101_v19 = vsel %vm97_vm1, %v100_v15, %v90_v11  ;;  %v225_v37 = vld [vmem:[#allocation8 + $0x5] ss:$0 sm:$0xff]  ;;  %v226_v39 = vld [vmem:[#allocation5 + $0x6] ss:$0 sm:$0xff]  ;;  %vm141_vm5 = vcmp.ge.f32.partialorder %v436_v0, %v223_v32  ;;  %v227_v41 = vld [vmem:[#allocation7 + $0x6] ss:$0 sm:$0xff] }
  0x1b   :  { %v105_v21 = vsel %vm97_vm1, %v104_v17, %v94_v14  ;;  %v111_v22 = vadd.f32 %v215_v13, %v101_v19  ;;  %v228_v44 = vld [vmem:[#allocation8 + $0x6] ss:$0 sm:$0xff]  ;;  %s387_s4 = smov [#allocation11]   ;;  %vm152_vm6 = vcmp.ge.f32.partialorder %v436_v0, %v226_v39  ;;  %s388_s21 = smov [#allocation10]  }
  0x1c   :  { %v115_v24 = vadd.f32 %v216_v16, %v105_v21  ;;  %s181_s17 = sshll.u32 %s387_s4, 4  ;;  %s170_s22 = sshll.u32 %s388_s21, 4  ;;  %s182_s17 = int_to_ptr.vmem [resolvable:$true] %s181_s17  ;;  %s171_s22 = int_to_ptr.vmem [resolvable:$true] %s170_s22 }
  0x1d   :  { %v112_v26 = vsel %vm108_vm2, %v111_v22, %v101_v19  ;;  %s172_s25 = sshll.u32 %s463_s5, 4  ;;  %s173_s25 = int_to_ptr.hbm [resolvable:$true] %s172_s25 }
  0x1e   :  { %v116_v28 = vsel %vm108_vm2, %v115_v24, %v105_v21  ;;  %v122_v29 = vadd.f32 %v218_v20, %v112_v26 }
  0x1f   :  { %v126_v31 = vadd.f32 %v219_v23, %v116_v28 }
  0x20   :  { %v123_v33 = vsel %vm119_vm3, %v122_v29, %v112_v26 }
  0x21   :  { %v127_v35 = vsel %vm119_vm3, %v126_v31, %v116_v28  ;;  %v133_v36 = vadd.f32 %v221_v27, %v123_v33 }
  0x22   :  { %v137_v38 = vadd.f32 %v222_v30, %v127_v35 }
  0x23   :  { %v134_v40 = vsel %vm130_vm4, %v133_v36, %v123_v33 }
  0x24   :  { %v138_v42 = vsel %vm130_vm4, %v137_v38, %v127_v35  ;;  %v144_v43 = vadd.f32 %v224_v34, %v134_v40 }
  0x25   :  { %v148_v45 = vadd.f32 %v225_v37, %v138_v42 }
  0x26   :  { %v145_v46 = vsel %vm141_vm5, %v144_v43, %v134_v40 }
  0x27   :  { %v149_v47 = vsel %vm141_vm5, %v148_v45, %v138_v42  ;;  %v155_v48 = vadd.f32 %v227_v41, %v145_v46 }
  0x28   :  { %v159_v49 = vadd.f32 %v228_v44, %v149_v47 }
  0x29   :  { %v156_v50 = vsel %vm152_vm6, %v155_v48, %v145_v46 }
  0x2a   :  { %v160_v51 = vsel %vm152_vm6, %v159_v49, %v149_v47  ;;  %v161_v52 = vmul.f32 %v156_v50, %v436_v0  ;;  %164 = vst [vmem:[#allocation11] sm:$0xff] %v156_v50 }
  0x2b   :  { %186 = dma.vmem_to_hbm [thread:$0]  %s182_s17, 128, %s184_s20, [#allocation12]  }
  0x2c   :  { %v162_v53 = vadd.f32 %v161_v52, %v160_v51 }
  0x2e   :  { %163 = vst [vmem:[#allocation10] sm:$0xff] %v162_v53 }
  0x2f   :  { %175 = dma.vmem_to_hbm [thread:$0]  %s171_s22, 128, %s173_s25, [#allocation4]  }
  0x30   :  { %379 = dma.done.wait [#allocation4], 128  }
  0x31   :  { %380 = vsyncadd [#allocation4], 4294967168 }
  0x32   :  { %381 = dma.done.wait [#allocation12], 128  }
  0x33   :  { %382 = vsyncadd [#allocation12], 4294967168 }
  0x34   :  { %195 = vsyncpa [#allocation3], 1 }
  0x35   :  { %196 = vsyncpa [#allocation6], 1 }
  0x36   :  { %197 = vsyncpa [#allocation9], 1 }
  0x37   :  { %198 = vsyncpa [#allocation4], 1 }
  0x38   :  { %199 = vsyncpa [#allocation12], 1 }

</bundles_post_ra>
